<compile_context>
chip_gen: v7x
topology: tpu7x:2x2x1
jax: 0.10.0
libtpu: 0.0.40
codegen_flags: <defaults>
</compile_context>

<pallas_src>
import functools

import jax
import jax.numpy as jnp
import numpy as np
from jax.experimental import pallas as pl
from jax.experimental.pallas import tpu as pltpu

_DEF_BLOCK_BYTES = 2 << 20  # ~2 MiB of VMEM per stream block (before double-buffering)


def _wl2_kernel(*refs, rows_total, tile_rows, has_perm, needs_mask):
    """One row tile.

    p/t : (TRr, L)  native dtype   (L = N*D lanes, (n, d) order for pred/target)
    v   : (TRr, L) streamed or (1, L) resident, native dtype
    nf  : (TRr, 1)  f32            (one not_finished value per (b, t) row)
    seg : (L, G)    f32 resident   (segment-indicator for the inner sum)
    perm: (L, L)    f32 resident   (lane permutation (d,n)->(n,d); only if has_perm)
    out : (1, 1, G) f32            (per-tile partial sum)
    """
    if has_perm:
        p_ref, t_ref, v_ref, nf_ref, seg_ref, perm_ref, out_ref = refs
    else:
        p_ref, t_ref, v_ref, nf_ref, seg_ref, out_ref = refs

    p = p_ref[...].astype(jnp.float32)
    t = t_ref[...].astype(jnp.float32)
    v = v_ref[...].astype(jnp.float32)
    if has_perm:
        # Re-order w's (d, n)-ordered lanes into pred's (n, d) order with one MXU
        # matmul against a constant permutation matrix (MXU is idle here).
        v = jnp.dot(v, perm_ref[...], preferred_element_type=jnp.float32)

    masked = (p - t) * v                                        # (TRr, L)  VPU
    # Segment-sum groups of lanes with one small MXU matmul.
    inner = jnp.dot(masked, seg_ref[...],
                    preferred_element_type=jnp.float32)         # (TRr, G)
    sq = inner * inner * nf_ref[...].astype(jnp.float32)        # (TRr, G)

    if needs_mask:
        # Ragged last row tile: rows past rows_total hold unspecified data.
        row = jax.lax.broadcasted_iota(jnp.int32, sq.shape, 0)
        limit = rows_total - pl.program_id(0) * tile_rows
        sq = jnp.where(row < limit, sq, 0.0)

    out_ref[...] = jnp.sum(sq, axis=0, keepdims=True)[None]     # (1, 1, G)


def _pick_tile_rows(rows, lanes, tile_rows):
    if tile_rows is None:
        lanes_padded = -(-lanes // 128) * 128                 # VMEM lane padding
        tile_rows = max(8, _DEF_BLOCK_BYTES // (lanes_padded * 4))
    if tile_rows >= rows:
        return rows                       # full-extent block is always legal
    return max(8, tile_rows // 8 * 8)     # second-minor block dim must be 8-aligned


def _wl2_call(p2, t2, v2, nf2, seg, perm, *, rows, lanes, groups,
              v_resident, tile_rows):
    trr = _pick_tile_rows(rows, lanes, tile_rows)
    grid = pl.cdiv(rows, trr)
    needs_mask = (rows % trr) != 0
    has_perm = perm is not None

    row_spec = pl.BlockSpec((trr, lanes), lambda i: (i, 0))
    in_specs = [
        row_spec,                                                   # pred
        row_spec,                                                   # target
        pl.BlockSpec((1, lanes), lambda i: (0, 0)) if v_resident    # val
        else row_spec,
        pl.BlockSpec((trr, 1), lambda i: (i, 0)),                   # not_finished
        pl.BlockSpec((lanes, groups), lambda i: (0, 0)),            # seg (resident)
    ]
    inputs = [p2, t2, v2, nf2, seg]
    if has_perm:
        in_specs.append(pl.BlockSpec((lanes, lanes), lambda i: (0, 0)))
        inputs.append(perm)

    partials = pl.pallas_call(
        functools.partial(_wl2_kernel, rows_total=rows, tile_rows=trr,
                          has_perm=has_perm, needs_mask=needs_mask),
        out_shape=jax.ShapeDtypeStruct((grid, 1, groups), jnp.float32),
        grid=(grid,),
        in_specs=in_specs,
        out_specs=pl.BlockSpec((1, 1, groups), lambda i: (i, 0, 0)),
        compiler_params=pltpu.CompilerParams(
            dimension_semantics=("parallel",),   # independent partials -> 2-TC sharding on v7x
            vmem_limit_bytes=48 << 20),
    )(*inputs)
    return jnp.sum(partials)                     # tiny (grid, 1, G) reduce in XLA


def _constant_over_leading(raw, inner2):
    """If `raw` broadcasts to `inner2` and is constant over all leading dims,
    return it broadcast to inner2 (tiny array); else None."""
    shp = raw.shape
    lead, trail = (shp[:-2], shp[-2:]) if len(shp) >= 2 else ((), shp)
    if any(s != 1 for s in lead):
        return None
    try:
        if np.broadcast_shapes(tuple(trail), tuple(inner2)) != tuple(inner2):
            return None
    except ValueError:
        return None
    return jnp.broadcast_to(raw.reshape(trail), inner2)


def weighted_l2_loss(pred, target, not_finished, args=None, proposal=True, *,
                     tile_rows=None):
    """Pallas port of WeightedL2Loss.forward (both branches)."""
    b, t, n, d = pred.shape
    rows = b * t
    lanes = n * d

    p2 = pred.reshape(rows, lanes)               # free reshapes: natural layout
    t2 = target.reshape(rows, lanes)
    nf2 = jnp.asarray(not_finished).astype(jnp.float32).reshape(rows, 1)

    perm = None
    if proposal:
        groups = n
        # lanes are (n, d)-ordered; the inner sum (dim=3) groups lanes by n.
        seg = (np.arange(lanes)[:, None] // d ==
               np.arange(groups)[None, :]).astype(np.float32)
        raw = jnp.asarray(args['m_preferences'])
        small = _constant_over_leading(raw, (n, d))
        if small is not None:
            v2, v_resident = small.reshape(1, lanes), True
        elif raw.shape == pred.shape:
            v2, v_resident = raw.reshape(rows, lanes), False
        else:
            # TODO(synk): partially-broadcast m_preferences (e.g. varying over T only)
            # still materializes a pred-sized copy here.
            v2 = jnp.broadcast_to(raw, pred.shape).reshape(rows, lanes)
            v_resident = False
    else:
        groups = d
        # After aligning val into (n, d) lane order, the inner sum (dim=2) groups by d.
        seg = (np.arange(lanes)[:, None] % d ==
               np.arange(groups)[None, :]).astype(np.float32)
        raw = jnp.asarray(args['w_preferences'])        # broadcastable to (b, t, d, n)
        small = _constant_over_leading(raw, (d, n))
        if small is not None:
            v2 = jnp.swapaxes(small, 0, 1).reshape(1, lanes)   # tiny (d,n)->(n,d)
            v_resident = True
        elif raw.shape == (b, t, d, n) and lanes <= 512:
            # Stream w in natural (d, n) lane order; permute in-kernel on the MXU.
            v2, v_resident = raw.reshape(rows, lanes), False
            perm = np.zeros((lanes, lanes), np.float32)
            dd, nn = np.meshgrid(np.arange(d), np.arange(n), indexing='ij')
            perm[(dd * n + nn).ravel(), (nn * d + dd).ravel()] = 1.0
        else:
            # TODO(synk): large N*D or partially-broadcast w_preferences falls back to
            # a wrapper-side transpose of w only (pred/target still stream naturally).
            v_full = jnp.broadcast_to(raw, (b, t, d, n))
            v2 = jnp.swapaxes(v_full, 2, 3).reshape(rows, lanes)
            v_resident = False

    return _wl2_call(p2, t2, v2, nf2, jnp.asarray(seg),
                     None if perm is None else jnp.asarray(perm),
                     rows=rows, lanes=lanes, groups=groups,
                     v_resident=v_resident, tile_rows=tile_rows)


def _reference(pred, target, not_finished, args, proposal=True):
    # Pure-JAX mirror of the PyTorch forward, for validation.
    pred = pred.astype(jnp.float32)
    target = target.astype(jnp.float32)
    nf = jnp.asarray(not_finished).astype(jnp.float32)
    if proposal:
        val = jnp.asarray(args['m_preferences']).astype(jnp.float32)
        per = jnp.sum((pred - target) * val, axis=3) ** 2           # (B, T, N)
    else:
        val = jnp.swapaxes(jnp.asarray(args['w_preferences']).astype(jnp.float32), -2, -1)
        per = jnp.sum((pred - target) * val, axis=2) ** 2           # (B, T, D)
    return jnp.sum(per * nf[:, :, None])


if __name__ == "__main__":
    B, T, N, D = 2, 8, 4, 16
    key = jax.random.PRNGKey(0)
    k1, k2, k3, k4, k5 = jax.random.split(key, 5)
    pred = jax.random.normal(k1, (B, T, N, D), dtype=jnp.float32)
    target = jax.random.normal(k2, (B, T, N, D), dtype=jnp.float32)
    m_pref = jax.random.uniform(k3, (B, T, N, D), dtype=jnp.float32)
    w_pref = jax.random.uniform(k4, (B, T, D, N), dtype=jnp.float32)
    not_finished = (jax.random.uniform(k5, (B, T)) > 0.3).astype(jnp.float32)
    args = {'m_preferences': m_pref, 'w_preferences': w_pref}

    def check(got, want, rtol, atol, tag):
        got = jax.block_until_ready(got)
        assert jnp.allclose(got, want, rtol=rtol, atol=atol), (tag, got, want)

    # 1) proposal=True (default), full-size m_preferences, f32 streams.
    check(weighted_l2_loss(pred, target, not_finished, args=args, proposal=True),
          _reference(pred, target, not_finished, args, proposal=True),
          1e-4, 1e-3, "proposal_f32")

    # 2) proposal=False, full-size w_preferences (in-kernel lane permutation).
    check(weighted_l2_loss(pred, target, not_finished, args=args, proposal=False),
          _reference(pred, target, not_finished, args, proposal=False),
          1e-4, 1e-3, "w_f32")

    # 3) VMEM-resident small preferences (constant over batch/time).
    args_small = {'m_preferences': m_pref[0, 0],          # (N, D)
                  'w_preferences': w_pref[:1, :1]}        # (1, 1, D, N)
    check(weighted_l2_loss(pred, target, not_finished, args=args_small, proposal=True),
          _reference(pred, target, not_finished, args_small, proposal=True),
          1e-4, 1e-3, "proposal_small_val")
    check(weighted_l2_loss(pred, target, not_finished, args=args_small, proposal=False),
          _reference(pred, target, not_finished, args_small, proposal=False),
          1e-4, 1e-3, "w_small_val")

    # 4) Native-bf16 streaming path (no wrapper upcast; kernel upcasts in-register).
    args_bf = {'m_preferences': m_pref.astype(jnp.bfloat16)}
    check(weighted_l2_loss(pred.astype(jnp.bfloat16), target.astype(jnp.bfloat16),
                           not_finished, args=args_bf, proposal=True),
          _reference(pred.astype(jnp.bfloat16), target.astype(jnp.bfloat16),
                     not_finished, args_bf, proposal=True),
          1e-3, 1e-2, "proposal_bf16")

    # 5) Ragged last row tile (rows not a multiple of tile_rows -> in-kernel mask).
    B2, T2 = 2, 9
    kk = jax.random.split(jax.random.PRNGKey(1), 4)
    pred2 = jax.random.normal(kk[0], (B2, T2, N, D), dtype=jnp.float32)
    target2 = jax.random.normal(kk[1], (B2, T2, N, D), dtype=jnp.float32)
    m2 = jax.random.uniform(kk[2], (B2, T2, N, D), dtype=jnp.float32)
    nf_r = (jax.random.uniform(kk[3], (B2, T2)) > 0.5).astype(jnp.float32)
    args2 = {'m_preferences': m2}
    check(weighted_l2_loss(pred2, target2, nf_r, args=args2, proposal=True, tile_rows=8),
          _reference(pred2, target2, nf_r, args2, proposal=True),
          1e-4, 1e-3, "ragged_tile")

    print("KERNEL_OK")
</pallas_src>

<mosaic_0001>
module attributes {stable_mosaic.version = 11 : i64} {
  func.func @_wl2_kernel(%arg0: i32, %arg1: memref<16x64xf32, #tpu.memory_space<vmem>>, %arg2: memref<16x64xf32, #tpu.memory_space<vmem>>, %arg3: memref<16x64xf32, #tpu.memory_space<vmem>>, %arg4: memref<16x1xf32, #tpu.memory_space<vmem>>, %arg5: memref<64x4xf32, #tpu.memory_space<vmem>>, %arg6: memref<1x1x4xf32, #tpu.memory_space<vmem>>) attributes {dimension_semantics = [#tpu.dimension_semantics<parallel>], iteration_bounds = array<i64: 1>, scalar_prefetch = 0 : i64, scratch_operands = 0 : i64, tpu.core_type = #tpu.core_type<tc>, window_params = [{transform_indices = @transform_0, window_bounds = array<i64: 16, 64>}, {transform_indices = @transform_1, window_bounds = array<i64: 16, 64>}, {transform_indices = @transform_2, window_bounds = array<i64: 16, 64>}, {transform_indices = @transform_3, window_bounds = array<i64: 16, 1>}, {pipeline_mode = #tpu.pipeline_mode<synchronous>, transform_indices = @transform_4, window_bounds = array<i64: 64, 4>}, {transform_indices = @transform_5, window_bounds = array<i64: 1, 1, 4>}]} {
    %c0 = arith.constant 0 : index
    %c0_0 = arith.constant 0 : index
    %0 = vector.load %arg1[%c0, %c0_0] : memref<16x64xf32, #tpu.memory_space<vmem>>, vector<16x64xf32>
    %c0_1 = arith.constant 0 : index
    %c0_2 = arith.constant 0 : index
    %1 = vector.load %arg2[%c0_1, %c0_2] : memref<16x64xf32, #tpu.memory_space<vmem>>, vector<16x64xf32>
    %c0_3 = arith.constant 0 : index
    %c0_4 = arith.constant 0 : index
    %2 = vector.load %arg3[%c0_3, %c0_4] : memref<16x64xf32, #tpu.memory_space<vmem>>, vector<16x64xf32>
    %3 = arith.subf %0, %1 : vector<16x64xf32>
    %4 = arith.mulf %3, %2 : vector<16x64xf32>
    %c0_5 = arith.constant 0 : index
    %c0_6 = arith.constant 0 : index
    %5 = vector.load %arg5[%c0_5, %c0_6] : memref<64x4xf32, #tpu.memory_space<vmem>>, vector<64x4xf32>
    %cst = arith.constant dense<0.000000e+00> : vector<16x4xf32>
    %6 = tpu.matmul %4, %5, %cst {dimension_numbers = #tpu.dot_dimension_numbers<[1], [0], [0], [1], [0, 0, 1, 1], [], []>} : vector<16x64xf32>, vector<64x4xf32>, vector<16x4xf32> -> vector<16x4xf32>
    %7 = arith.mulf %6, %6 : vector<16x4xf32>
    %c0_7 = arith.constant 0 : index
    %c0_8 = arith.constant 0 : index
    %8 = vector.load %arg4[%c0_7, %c0_8] : memref<16x1xf32, #tpu.memory_space<vmem>>, vector<16x1xf32>
    %9 = vector.broadcast %8 : vector<16x1xf32> to vector<16x4xf32>
    %10 = arith.mulf %7, %9 : vector<16x4xf32>
    %cst_9 = arith.constant dense<0.000000e+00> : vector<4xf32>
    %11 = vector.multi_reduction <add>, %10, %cst_9 [0] : vector<16x4xf32> to vector<4xf32>
    %12 = vector.shape_cast %11 : vector<4xf32> to vector<1x4xf32>
    %13 = vector.shape_cast %12 : vector<1x4xf32> to vector<1x1x4xf32>
    %c0_10 = arith.constant 0 : index
    %c0_11 = arith.constant 0 : index
    %c0_12 = arith.constant 0 : index
    %14 = vector.load %arg6[%c0_10, %c0_11, %c0_12] : memref<1x1x4xf32, #tpu.memory_space<vmem>>, vector<1x1x4xf32>
    tpu.vector_store %arg6[%c0_10, %c0_11, %c0_12], %13 {strides = array<i32>} : memref<1x1x4xf32, #tpu.memory_space<vmem>>, vector<1x1x4xf32>,
    return
  }
  func.func @transform_0(%arg0: i32) -> (i32, i32) {
    %c0_i32 = arith.constant 0 : i32
    %c0_i32_0 = arith.constant 0 : i32
    return %arg0, %c0_i32 : i32, i32
  }
  func.func @transform_1(%arg0: i32) -> (i32, i32) {
    %c0_i32 = arith.constant 0 : i32
    %c0_i32_0 = arith.constant 0 : i32
    return %arg0, %c0_i32 : i32, i32
  }
  func.func @transform_2(%arg0: i32) -> (i32, i32) {
    %c0_i32 = arith.constant 0 : i32
    %c0_i32_0 = arith.constant 0 : i32
    return %arg0, %c0_i32 : i32, i32
  }
  func.func @transform_3(%arg0: i32) -> (i32, i32) {
    %c0_i32 = arith.constant 0 : i32
    %c0_i32_0 = arith.constant 0 : i32
    return %arg0, %c0_i32 : i32, i32
  }
  func.func @transform_4(%arg0: i32) -> (i32, i32) {
    %c0_i32 = arith.constant 0 : i32
    %c0_i32_0 = arith.constant 0 : i32
    %c0_i32_1 = arith.constant 0 : i32
    return %c0_i32, %c0_i32_0 : i32, i32
  }
  func.func @transform_5(%arg0: i32) -> (i32, i32, i32) {
    %c0_i32 = arith.constant 0 : i32
    %c0_i32_0 = arith.constant 0 : i32
    %c0_i32_1 = arith.constant 0 : i32
    return %arg0, %c0_i32, %c0_i32_0 : i32, i32, i32
  }
}

</mosaic_0001>

<bundles_post_ra>
// kernel: tpu_custom_call.1
= control target key start
LH: loop header
LB: loop body
LE: loop exit
PB: predicated region body
PF: predicated region fallthrough
CT: control target
= control target key end

     0   :  { %v237_v5 = vmov 0   ;;  %vm39_vm0 = vcmask 523264   ;;  %s331_s0 = inlined_call_operand.vmem [shape: f32[16,64], index: 0, kind: input, shape index: {}]   ;;  %s332_s1 = inlined_call_operand.vmem [shape: f32[16,64], index: 1, kind: input, shape index: {}]   ;;  %s333_s2 = inlined_call_operand.vmem [shape: f32[16,64], index: 2, kind: input, shape index: {}]   ;;  %s334_s3 = inlined_call_operand.vmem [shape: f32[16,1], index: 3, kind: input, shape index: {}]   ;;  %s335_s4 = inlined_call_operand.vmem [shape: f32[64,4], index: 4, kind: input, shape index: {}]   ;;  %s336_s5 = inlined_call_operand.hbm [shape: f32[1,1,4], index: 5, kind: output, shape index: {}]  }
   0x1   :  { %v31_v0 = vld [vmem:[%s335_s4] sm:$0xff]  ;;  %v32_v1 = vld [vmem:[%s335_s4 + $0x8] sm:$0xff]  ;;  %v33_v2 = vld [vmem:[%s335_s4 + $0x10] sm:$0xff]  ;;  %212 = vset.pattern.permute.xlu0 %v237_v5 }
   0x2   :  { %v194_v3 = vpack.c.bf16 %v32_v1, %v31_v0  ;;  %v34_v4 = vld [vmem:[%s335_s4 + $0x18] sm:$0xff]  ;;  %v35_v7 = vld [vmem:[%s335_s4 + $0x20] sm:$0xff]  ;;  %v36_v8 = vld [vmem:[%s335_s4 + $0x28] sm:$0xff] }
   0x3   :  { %v198_v6 = vpack.c.bf16 %v34_v4, %v33_v2  ;;  %v21_v9 = vld [vmem:[%s331_s0] sm:$0xff]  ;;  %v202_v14 = vpack.c.bf16 %v36_v8, %v35_v7 }
   0x4   :  { %195 = vmatprep.subr.bf16.mxu0 %v194_v3  ;;  %v23_v10 = vld [vmem:[%s332_s1] sm:$0xff] }
   0x5   :  { %v25_v11 = vld [vmem:[%s333_s2] sm:$0xff]  ;;  %197 = vmatpush3.bf16.msra.mxu0 %v194_v3  ;;  %v27_v12 = vsub.f32 %v21_v9, %v23_v10 }
   0x6   :  { %v123_v13 = vld [vmem:[%s334_s3] sm:$0xff]  ;;  %199 = vmatprep.subr.bf16.mxu0 %v198_v6 }
   0x7   :  { %127 = vperm.xlu0 %212, %v123_v13  }
   0x8   :  { %10 = vsyncpa [#allocation3], 0  ;;  %v37_v15 = vld [vmem:[%s335_s4 + $0x30] sm:$0xff]  ;;  %v38_v16 = vld [vmem:[%s335_s4 + $0x38] sm:$0xff]  ;;  %v29_v17 = vmul.f32 %v27_v12, %v25_v11  ;;  %vm137_vm1 = vcmask 31744   ;;  %vm147_vm2 = vcmask 24576  }
   0x9   :  { %v124_v18 = vld [vmem:[%s334_s3 + $0x8] sm:$0xff]  ;;  %201 = vmatpush3.bf16.msra.mxu0 %v198_v6  ;;  %v206_v21 = vpack.c.bf16 %v38_v16, %v37_v15 }
   0xa   :  { %191 = vmatprep.mubr.msk.f32.mxu0 %vm39_vm0, %v29_v17  ;;  %v22_v19 = vld [vmem:[%s331_s0 + $0x8] sm:$0xff]  ;;  %203 = vmatprep.subr.bf16.mxu0 %v202_v14  ;;  %s238_s0 = smov [#allocation2]  }
   0xb   :  { %v24_v20 = vld [vmem:[%s332_s1 + $0x8] sm:$0xff]  ;;  %132 = vperm.xlu0 %212, %v124_v18   ;;  %s155_s1 = sshll.u32 %s238_s0, 4  ;;  %s156_s1 = int_to_ptr.vmem [resolvable:$true] %s155_s1 }
   0xc   :  { %v28_v22 = vsub.f32 %v22_v19, %v24_v20  ;;  %v26_v23 = vld [vmem:[%s333_s2 + $0x8] sm:$0xff]  ;;  %s213_s2 = scalar_lea.vmem %s156_s1, 16  ;;  %s217_s3 = scalar_lea.vmem %s156_s1, 32 }
   0xd   :  { %205 = vmatpush3.bf16.msra.mxu0 %v202_v14  ;;  %p214_p0 = scmp.ne.s32.totalorder %s156_s1, %s213_s2  ;;  %p218_p1 = scmp.lt.s32.totalorder %s156_s1, %s156_s1 }
   0xe   :  { %207 = vmatprep.subr.bf16.mxu0 %v206_v21  ;;  %v30_v24 = vmul.f32 %v28_v22, %v26_v23  ;;  %p219_p2 = scmp.lt.s32.totalorder %s217_s3, %s213_s2 }
  0x10   :  { %p220_p3 = por %p219_p2, %p218_p1 }
  0x11   :  { %209 = vmatpush3.bf16.msra.mxu0 %v206_v21 }
  0x12   :  { %p221_p4 = pnand %p220_p3, %p214_p0 }
  0x14   :  { %192 = vmatmul.mubr.msk.f32.vlgmr.msra.gmra.mrb[0].mxu0 %vm39_vm0, %v30_v24 }
  0x86   :  { %v128_v25 = vpop.permute.xlu0 %127 }
  0x8a   :  { %v133_v29 = vpop.permute.xlu0 %132 }
  0xe7   :  { %v193_v26 = vpop.f32.mrb[0].mxu0 }
  0xe8   :  { %v122_v27 = vmul.f32 %v193_v26, %v193_v26  ;;  %v112_v28 = vpop.f32.mrb[1].mxu0 }
  0xe9   :  { %v121_v30 = vmul.f32 %v112_v28, %v112_v28 }
  0xea   :  { %v136_v31 = vmul.f32 %v133_v29, %v122_v27 }
  0xeb   :  { %v135_v32 = vmul.f32 %v128_v25, %v121_v30 }
  0xec   :  { %v139_v33 = vsel %vm137_vm1, %v136_v31, 0.0 }
  0xed   :  { %v138_v34 = vsel %vm137_vm1, %v135_v32, 0.0 }
  0xee   :  { %v140_v35 = vadd.f32 %v139_v33, %v138_v34 }
  0xf0   :  { %v141_v36 = vrot.slane %v140_v35, 4 }
  0xf2   :  { %v142_v37 = vadd.f32 %v141_v36, %v140_v35 }
  0xf4   :  { %v143_v38 = vrot.slane %v142_v37, 2 }
  0xf6   :  { %v144_v39 = vadd.f32 %v143_v38, %v142_v37 }
  0xf8   :  { %v145_v40 = vrot.slane %v144_v39, 1 }
  0xfa   :  { %v146_v41 = vadd.f32 %v145_v40, %v144_v39 }
  0xfc   :  { %148 = vst.msk [vmem:[#allocation2] sm:$0x1] %vm147_vm2, %v146_v41 }
  0xfd   :  { %224 = shalt.err (!%p221_p4)
}
  0xfe   :  { %s225_s26 = scalar_lea.hbm %s336_s5, 16 }
  0xff   :  { %p226_p5 = scmp.ne.s32.totalorder %s336_s5, %s225_s26  ;;  %p229_p6 = scmp.lt.u32.totalorder %s225_s26, %s336_s5 }
 0x101   :  { %p231_p7 = pnand %p229_p6, %p226_p5 }
 0x103   :  { %234 = shalt.err (!%p231_p7)
}
 0x104   :  { %158 = dma.vmem_to_hbm [thread:$0]  %s156_s1, 16, %s336_s5, [#allocation3]  }
 0x105   :  { %235 = dma.done.wait [#allocation3], 16  }
 0x106   :  { %236 = vsyncadd [#allocation3], 4294967280 }
 0x107   :  { %162 = vsyncpa [#allocation3], 1 }

</bundles_post_ra>
